<compile_context>
chip_gen: v6e
topology: v6e:2x2x1
jax: 0.10.0
libtpu: 0.0.40
codegen_flags: <defaults>
</compile_context>

<pallas_src>
import jax
import jax.numpy as jnp
from jax.experimental import pallas as pl
from jax.experimental.pallas import tpu as pltpu

_D_IN = 13
_D_HID = 100
_D_OUT = 4
_PAD_HID = 128   # hidden dim zero-padded to vreg/MXU-native 128 lanes
_TILE_B_CAP = 4096


def _leaky_relu(x, slope=0.01):
    return jnp.where(x > 0, x, slope * x)


def _round_up(n, m):
    return -(-n // m) * m


def ampc_mlp_kernel(x_ref, w1_ref, b1_ref, w2_ref, b2_ref, w3_ref, b3_ref, o_ref):
    f32 = jnp.float32
    # Layer 1: K=13, kept in f32 (cheap; preserves input-layer accuracy).
    h = jnp.dot(x_ref[...], w1_ref[...], preferred_element_type=f32) + b1_ref[...]
    h = _leaky_relu(h)                                               # (TB, 128) f32
    # Layers 2/3: operands in the weights' dtype (bf16 fast path / f32 exact
    # path), accumulate in f32 on the MXU.
    h = jnp.dot(h.astype(w2_ref.dtype), w2_ref[...],
                preferred_element_type=f32) + b2_ref[...]
    h = _leaky_relu(h)                                               # (TB, 128) f32
    o = jnp.dot(h.astype(w3_ref.dtype), w3_ref[...],
                preferred_element_type=f32) + b3_ref[...]            # (TB, 4) f32
    o_ref[...] = o.astype(o_ref.dtype)


def _pad_to(a, shape):
    pads = [(0, t - s) for s, t in zip(a.shape, shape)]
    if all(p == (0, 0) for p in pads):
        return a
    return jnp.pad(a, pads)


def prepare_params(params, matmul_dtype=jnp.bfloat16):
    """One-time padding (100->128, exact) + matmul-operand dtype cast.

    Biases stay f32 (added post-accumulation).  Use matmul_dtype=jnp.float32
    for strict numerical parity with the PyTorch module.
    """
    w1, b1, w2, b2, w3, b3 = params
    w1p = _pad_to(w1.astype(jnp.float32), (_D_IN, _PAD_HID))
    b1p = _pad_to(jnp.asarray(b1, jnp.float32).reshape(1, -1), (1, _PAD_HID))
    w2p = _pad_to(w2, (_PAD_HID, _PAD_HID)).astype(matmul_dtype)
    b2p = _pad_to(jnp.asarray(b2, jnp.float32).reshape(1, -1), (1, _PAD_HID))
    w3p = _pad_to(w3, (_PAD_HID, _D_OUT)).astype(matmul_dtype)
    b3p = jnp.asarray(b3, jnp.float32).reshape(1, _D_OUT)
    return (w1p, b1p, w2p, b2p, w3p, b3p)


def _default_tile_b(B):
    # >= 2 grid steps whenever possible (megacore sharding on v7x), rows a
    # multiple of 8 (f32 sublane), capped so per-step VMEM stays modest and
    # per-step pipeline overhead is amortized.
    return min(_TILE_B_CAP, max(8, _round_up(-(-B // 2), 8)))


def ampc_predictor(x, prepared_params, *, tile_b=None):
    """x: (B, 13) float32 -> (B, 4) float32."""
    w1p, b1p, w2p, b2p, w3p, b3p = prepared_params
    B, d_in = x.shape
    assert d_in == _D_IN

    if tile_b is None:
        tile_b = _default_tile_b(B)
    assert tile_b % 8 == 0, "tile_b must be a multiple of 8 (f32 sublane)"
    B_pad = _round_up(B, tile_b)
    x_pad = x if B_pad == B else jnp.pad(x, ((0, B_pad - B), (0, 0)))

    grid = (B_pad // tile_b,)
    rep = lambda shape: pl.BlockSpec(shape, lambda i: (0, 0))

    out = pl.pallas_call(
        ampc_mlp_kernel,
        out_shape=jax.ShapeDtypeStruct((B_pad, _D_OUT), jnp.float32),
        grid_spec=pltpu.PrefetchScalarGridSpec(
            num_scalar_prefetch=0,
            grid=grid,
            in_specs=[
                pl.BlockSpec((tile_b, _D_IN), lambda i: (i, 0)),   # x (13 lanes on purpose)
                rep((_D_IN, _PAD_HID)),                            # w1
                rep((1, _PAD_HID)),                                # b1
                rep((_PAD_HID, _PAD_HID)),                         # w2
                rep((1, _PAD_HID)),                                # b2
                rep((_PAD_HID, _D_OUT)),                           # w3 (narrow: 4 cols)
                rep((1, _D_OUT)),                                  # b3
            ],
            out_specs=pl.BlockSpec((tile_b, _D_OUT), lambda i: (i, 0)),
        ),
        compiler_params=pltpu.CompilerParams(
            dimension_semantics=("parallel",),
            vmem_limit_bytes=48 * 1024 * 1024),
    )(x_pad, w1p, b1p, w2p, b2p, w3p, b3p)

    return out if B_pad == B else out[:B]


def init_params(key, d_in=_D_IN, d_h=_D_HID, d_out=_D_OUT):
    """Deterministic init mimicking nn.Linear's U(-1/sqrt(fan_in), 1/sqrt(fan_in))."""
    ks = jax.random.split(key, 6)

    def lin(kw, kb, fan_in, fan_out):
        bound = 1.0 / jnp.sqrt(fan_in)
        w = jax.random.uniform(kw, (fan_in, fan_out), jnp.float32, -bound, bound)
        b = jax.random.uniform(kb, (1, fan_out), jnp.float32, -bound, bound)
        return w, b

    w1, b1 = lin(ks[0], ks[1], d_in, d_h)
    w2, b2 = lin(ks[2], ks[3], d_h, d_h)
    w3, b3 = lin(ks[4], ks[5], d_h, d_out)
    return (w1, b1, w2, b2, w3, b3)


def reference_forward(x, params):
    w1, b1, w2, b2, w3, b3 = params
    h = jax.nn.leaky_relu(x @ w1 + b1, negative_slope=0.01)
    h = jax.nn.leaky_relu(h @ w2 + b2, negative_slope=0.01)
    return h @ w3 + b3


if __name__ == "__main__":
    key = jax.random.PRNGKey(0)
    k_param, k_x = jax.random.split(key)
    params = init_params(k_param)

    # --- f32 matmul-operand path: exact parity with the module, 1 grid step.
    pf32 = prepare_params(params, matmul_dtype=jnp.float32)
    B = 8
    x = jax.random.normal(k_x, (B, _D_IN), jnp.float32)
    out = jax.block_until_ready(ampc_predictor(x, pf32))
    ref = reference_forward(x, params)
    assert out.shape == (B, _D_OUT), out.shape
    assert jnp.allclose(out, ref, atol=1e-5, rtol=1e-5), \
        float(jnp.max(jnp.abs(out - ref)))

    # --- bf16 fast path: multi-step grid + batch-padding (B not a tile mult).
    pbf16 = prepare_params(params)  # bf16 matmul operands, f32 accumulation
    B2 = 20
    x2 = jax.random.normal(jax.random.PRNGKey(1), (B2, _D_IN), jnp.float32)
    out2 = jax.block_until_ready(ampc_predictor(x2, pbf16, tile_b=8))
    ref2 = reference_forward(x2, params)
    assert out2.shape == (B2, _D_OUT), out2.shape
    assert jnp.allclose(out2, ref2, atol=5e-2, rtol=5e-2), \
        float(jnp.max(jnp.abs(out2 - ref2)))

    # --- default tile selection path (auto tile_b -> >= 2 grid steps).
    B3 = 64
    x3 = jax.random.normal(jax.random.PRNGKey(2), (B3, _D_IN), jnp.float32)
    out3 = jax.block_until_ready(ampc_predictor(x3, pbf16))
    ref3 = reference_forward(x3, params)
    assert out3.shape == (B3, _D_OUT), out3.shape
    assert jnp.allclose(out3, ref3, atol=5e-2, rtol=5e-2), \
        float(jnp.max(jnp.abs(out3 - ref3)))

    print("KERNEL_OK")
</pallas_src>

<mosaic_0001>
module attributes {stable_mosaic.version = 11 : i64} {
  func.func @ampc_mlp_kernel(%arg0: i32, %arg1: memref<8x13xf32, #tpu.memory_space<vmem>>, %arg2: memref<13x128xf32, #tpu.memory_space<vmem>>, %arg3: memref<1x128xf32, #tpu.memory_space<vmem>>, %arg4: memref<128x128xf32, #tpu.memory_space<vmem>>, %arg5: memref<1x128xf32, #tpu.memory_space<vmem>>, %arg6: memref<128x4xf32, #tpu.memory_space<vmem>>, %arg7: memref<1x4xf32, #tpu.memory_space<vmem>>, %arg8: memref<8x4xf32, #tpu.memory_space<vmem>>) attributes {dimension_semantics = [#tpu.dimension_semantics<parallel>], iteration_bounds = array<i64: 1>, scalar_prefetch = 0 : i64, scratch_operands = 0 : i64, tpu.core_type = #tpu.core_type<tc>, window_params = [{transform_indices = @transform_0, window_bounds = array<i64: 8, 13>}, {pipeline_mode = #tpu.pipeline_mode<synchronous>, transform_indices = @transform_1, window_bounds = array<i64: 13, 128>}, {pipeline_mode = #tpu.pipeline_mode<synchronous>, transform_indices = @transform_2, window_bounds = array<i64: 1, 128>}, {pipeline_mode = #tpu.pipeline_mode<synchronous>, transform_indices = @transform_3, window_bounds = array<i64: 128, 128>}, {pipeline_mode = #tpu.pipeline_mode<synchronous>, transform_indices = @transform_4, window_bounds = array<i64: 1, 128>}, {pipeline_mode = #tpu.pipeline_mode<synchronous>, transform_indices = @transform_5, window_bounds = array<i64: 128, 4>}, {pipeline_mode = #tpu.pipeline_mode<synchronous>, transform_indices = @transform_6, window_bounds = array<i64: 1, 4>}, {transform_indices = @transform_7, window_bounds = array<i64: 8, 4>}]} {
    %c0 = arith.constant 0 : index
    %c0_0 = arith.constant 0 : index
    %0 = vector.load %arg1[%c0, %c0_0] : memref<8x13xf32, #tpu.memory_space<vmem>>, vector<8x13xf32>
    %c0_1 = arith.constant 0 : index
    %c0_2 = arith.constant 0 : index
    %1 = vector.load %arg2[%c0_1, %c0_2] : memref<13x128xf32, #tpu.memory_space<vmem>>, vector<13x128xf32>
    %cst = arith.constant dense<0.000000e+00> : vector<8x128xf32>
    %2 = tpu.matmul %0, %1, %cst {dimension_numbers = #tpu.dot_dimension_numbers<[1], [0], [0], [1], [0, 0, 1, 1], [], []>} : vector<8x13xf32>, vector<13x128xf32>, vector<8x128xf32> -> vector<8x128xf32>
    %c0_3 = arith.constant 0 : index
    %c0_4 = arith.constant 0 : index
    %3 = vector.load %arg3[%c0_3, %c0_4] : memref<1x128xf32, #tpu.memory_space<vmem>>, vector<1x128xf32>
    %4 = vector.broadcast %3 : vector<1x128xf32> to vector<8x128xf32>
    %5 = arith.addf %2, %4 : vector<8x128xf32>
    %cst_5 = arith.constant 0.000000e+00 : f32
    %6 = vector.broadcast %cst_5 : f32 to vector<8x128xf32>
    %7 = arith.cmpf ogt, %5, %6 : vector<8x128xf32>
    %cst_6 = arith.constant 0.00999999977 : f32
    %8 = vector.broadcast %cst_6 : f32 to vector<8x128xf32>
    %9 = arith.mulf %8, %5 : vector<8x128xf32>
    %10 = arith.select %7, %5, %9 : vector<8x128xi1>, vector<8x128xf32>
    %c0_7 = arith.constant 0 : index
    %c0_8 = arith.constant 0 : index
    %11 = vector.load %arg4[%c0_7, %c0_8] : memref<128x128xf32, #tpu.memory_space<vmem>>, vector<128x128xf32>
    %cst_9 = arith.constant dense<0.000000e+00> : vector<8x128xf32>
    %12 = tpu.matmul %10, %11, %cst_9 {dimension_numbers = #tpu.dot_dimension_numbers<[1], [0], [0], [1], [0, 0, 1, 1], [], []>} : vector<8x128xf32>, vector<128x128xf32>, vector<8x128xf32> -> vector<8x128xf32>
    %c0_10 = arith.constant 0 : index
    %c0_11 = arith.constant 0 : index
    %13 = vector.load %arg5[%c0_10, %c0_11] : memref<1x128xf32, #tpu.memory_space<vmem>>, vector<1x128xf32>
    %14 = vector.broadcast %13 : vector<1x128xf32> to vector<8x128xf32>
    %15 = arith.addf %12, %14 : vector<8x128xf32>
    %cst_12 = arith.constant 0.000000e+00 : f32
    %16 = vector.broadcast %cst_12 : f32 to vector<8x128xf32>
    %17 = arith.cmpf ogt, %15, %16 : vector<8x128xf32>
    %cst_13 = arith.constant 0.00999999977 : f32
    %18 = vector.broadcast %cst_13 : f32 to vector<8x128xf32>
    %19 = arith.mulf %18, %15 : vector<8x128xf32>
    %20 = arith.select %17, %15, %19 : vector<8x128xi1>, vector<8x128xf32>
    %c0_14 = arith.constant 0 : index
    %c0_15 = arith.constant 0 : index
    %21 = vector.load %arg6[%c0_14, %c0_15] : memref<128x4xf32, #tpu.memory_space<vmem>>, vector<128x4xf32>
    %cst_16 = arith.constant dense<0.000000e+00> : vector<8x4xf32>
    %22 = tpu.matmul %20, %21, %cst_16 {dimension_numbers = #tpu.dot_dimension_numbers<[1], [0], [0], [1], [0, 0, 1, 1], [], []>} : vector<8x128xf32>, vector<128x4xf32>, vector<8x4xf32> -> vector<8x4xf32>
    %c0_17 = arith.constant 0 : index
    %c0_18 = arith.constant 0 : index
    %23 = vector.load %arg7[%c0_17, %c0_18] : memref<1x4xf32, #tpu.memory_space<vmem>>, vector<1x4xf32>
    %24 = vector.broadcast %23 : vector<1x4xf32> to vector<8x4xf32>
    %25 = arith.addf %22, %24 : vector<8x4xf32>
    %c0_19 = arith.constant 0 : index
    %c0_20 = arith.constant 0 : index
    %26 = vector.load %arg8[%c0_19, %c0_20] : memref<8x4xf32, #tpu.memory_space<vmem>>, vector<8x4xf32>
    tpu.vector_store %arg8[%c0_19, %c0_20], %25 {strides = array<i32>} : memref<8x4xf32, #tpu.memory_space<vmem>>, vector<8x4xf32>,
    return
  }
  func.func @transform_0(%arg0: i32) -> (i32, i32) {
    %c0_i32 = arith.constant 0 : i32
    %c0_i32_0 = arith.constant 0 : i32
    return %arg0, %c0_i32 : i32, i32
  }
  func.func @transform_1(%arg0: i32) -> (i32, i32) {
    %c0_i32 = arith.constant 0 : i32
    %c0_i32_0 = arith.constant 0 : i32
    %c0_i32_1 = arith.constant 0 : i32
    return %c0_i32, %c0_i32_0 : i32, i32
  }
  func.func @transform_2(%arg0: i32) -> (i32, i32) {
    %c0_i32 = arith.constant 0 : i32
    %c0_i32_0 = arith.constant 0 : i32
    %c0_i32_1 = arith.constant 0 : i32
    return %c0_i32, %c0_i32_0 : i32, i32
  }
  func.func @transform_3(%arg0: i32) -> (i32, i32) {
    %c0_i32 = arith.constant 0 : i32
    %c0_i32_0 = arith.constant 0 : i32
    %c0_i32_1 = arith.constant 0 : i32
    return %c0_i32, %c0_i32_0 : i32, i32
  }
  func.func @transform_4(%arg0: i32) -> (i32, i32) {
    %c0_i32 = arith.constant 0 : i32
    %c0_i32_0 = arith.constant 0 : i32
    %c0_i32_1 = arith.constant 0 : i32
    return %c0_i32, %c0_i32_0 : i32, i32
  }
  func.func @transform_5(%arg0: i32) -> (i32, i32) {
    %c0_i32 = arith.constant 0 : i32
    %c0_i32_0 = arith.constant 0 : i32
    %c0_i32_1 = arith.constant 0 : i32
    return %c0_i32, %c0_i32_0 : i32, i32
  }
  func.func @transform_6(%arg0: i32) -> (i32, i32) {
    %c0_i32 = arith.constant 0 : i32
    %c0_i32_0 = arith.constant 0 : i32
    %c0_i32_1 = arith.constant 0 : i32
    return %c0_i32, %c0_i32_0 : i32, i32
  }
  func.func @transform_7(%arg0: i32) -> (i32, i32) {
    %c0_i32 = arith.constant 0 : i32
    %c0_i32_0 = arith.constant 0 : i32
    return %arg0, %c0_i32 : i32, i32
  }
}

</mosaic_0001>

<bundles_post_ra>
// kernel: tpu_custom_call.1
= control target key start
LH: loop header
LB: loop body
LE: loop exit
PB: predicated region body
PF: predicated region fallthrough
CT: control target
= control target key end

     0   :  { %12 = vsyncpa [#allocation3], 0  ;;  %s709_s0 = inlined_call_operand.vmem [shape: f32[8,13], index: 0, kind: input, shape index: {}]   ;;  %s710_s1 = inlined_call_operand.hbm [shape: f32[13,128], index: 1, kind: input, shape index: {}]   ;;  %s711_s2 = inlined_call_operand.vmem [shape: f32[1,128], index: 2, kind: input, shape index: {}]   ;;  %s712_s3 = inlined_call_operand.vmem [shape: f32[128,128], index: 3, kind: input, shape index: {}]   ;;  %s713_s4 = inlined_call_operand.hbm [shape: f32[1,128], index: 4, kind: input, shape index: {}]   ;;  %s714_s5 = inlined_call_operand.vmem [shape: f32[128,4], index: 5, kind: input, shape index: {}]   ;;  %s715_s6 = inlined_call_operand.vmem [shape: f32[1,4], index: 6, kind: input, shape index: {}]   ;;  %s716_s7 = inlined_call_operand.vmem [shape: f32[8,4], index: 7, kind: output, shape index: {}]  }
   0x1   :  { %13 = vsyncpa [#allocation5], 0  ;;  %s509_s24 = smov [#allocation2]  }
   0x2   :  { %s21_s25 = sshll.u32 %s509_s24, 4  ;;  %s22_s25 = int_to_ptr.vmem [resolvable:$true] %s21_s25 }
   0x3   :  { %s473_s26 = scalar_lea.vmem %s22_s25, 256  ;;  %p478_p1 = scmp.lt.s32.totalorder %s22_s25, %s22_s25 }
   0x4   :  { %p474_p0 = scmp.ne.s32.totalorder %s22_s25, %s473_s26  ;;  %p479_p2 = scmp.lt.s32.totalorder %s473_s26, %s473_s26 }
   0x6   :  { %p480_p3 = por %p479_p2, %p478_p1 }
   0x8   :  { %p481_p4 = pnand %p480_p3, %p474_p0 }
   0xa   :  { %484 = shalt.err (!%p481_p4)
}
   0xb   :  { %s510_s27 = smov 128   ;;  %s511_s28 = smov 8  }
   0xc   :  { %27 = dma.hbm_to_vmem [thread:$0]  %s710_s1, 256, %s22_s25, [#allocation3], %s510_s27, %s510_s27, %s511_s28  }
   0xd   :  { %s512_s8 = smov [#allocation4]  }
   0xe   :  { %s38_s9 = sshll.u32 %s512_s8, 4  ;;  %s39_s9 = int_to_ptr.vmem [resolvable:$true] %s38_s9 }
   0xf   :  { %s493_s10 = scalar_lea.vmem %s39_s9, 16  ;;  %s497_s11 = scalar_lea.vmem %s39_s9, 32 }
  0x10   :  { %p494_p5 = scmp.ne.s32.totalorder %s39_s9, %s493_s10  ;;  %p498_p6 = scmp.lt.s32.totalorder %s39_s9, %s39_s9 }
  0x11   :  { %p499_p7 = scmp.lt.s32.totalorder %s497_s11, %s493_s10 }
  0x13   :  { %p500_p8 = por %p499_p7, %p498_p6 }
  0x15   :  { %p501_p9 = pnand %p500_p8, %p494_p5 }
  0x17   :  { %504 = shalt.err (!%p501_p9)
}
  0x18   :  { %41 = dma.hbm_to_vmem [thread:$0]  %s713_s4, 16, %s39_s9, [#allocation5]  }
  0x19   :  { %505 = dma.done.wait [#allocation3], 256  }
  0x1a   :  { %506 = vsyncadd [#allocation3], 4294967040 }
  0x1b   :  { %507 = dma.done.wait [#allocation5], 16  }
  0x1c   :  { %508 = vsyncadd [#allocation5], 4294967280  ;;  %v513_v0 = vmov 0.0   ;;  %vm514_vm0 = vmmov 0   ;;  %vm66_vm1 = vcmask 1044480   ;;  %v53_v2 = vld [vmem:[#allocation2] sm:$0xff] }
  0x1d   :  { %382 = vmatprep.subr.mxu0 %v513_v0  ;;  %386 = vmatprep.mubr.msk.f32.mxu0 %vm514_vm0, %v513_v0  ;;  %v54_v1 = vld [vmem:[#allocation2 + $0x8] sm:$0x1f]  ;;  %v52_v3 = vld [vmem:[%s709_s0] sm:$0xff]  ;;  %vm62_vm2 = vcmask 105472   ;;  %v158_v4 = vld [vmem:[%s712_s3 + $0x78] sm:$0xff]  ;;  %vm332_vm5 = vcmask 31744  }
  0x1e   :  { %389 = vmatprep.subr.mxu1 %v513_v0  ;;  %421 = vmatprep.mubr.msk.f32.mxu1 %vm514_vm0, %v513_v0  ;;  %v157_v5 = vld [vmem:[%s712_s3 + $0x70] sm:$0xff]  ;;  %v156_v6 = vld [vmem:[%s712_s3 + $0x68] sm:$0xff]  ;;  %v155_v7 = vld [vmem:[%s712_s3 + $0x60] sm:$0xff] }
  0x1f   :  { %383 = vmatpush3.msk.msra.mxu0 %vm66_vm1, %v54_v1  ;;  %390 = vmatpush3.msra.mxu1 %v158_v4  ;;  %v154_v8 = vld [vmem:[%s712_s3 + $0x58] sm:$0xff]  ;;  %v153_v9 = vld [vmem:[%s712_s3 + $0x50] sm:$0xff]  ;;  %v152_v10 = vld [vmem:[%s712_s3 + $0x48] sm:$0xff] }
  0x20   :  { %384 = vmatprep.subr.mxu0 %v513_v0  ;;  %391 = vmatprep.subr.mxu1 %v513_v0  ;;  %v151_v11 = vld [vmem:[%s712_s3 + $0x40] sm:$0xff]  ;;  %v150_v12 = vld [vmem:[%s712_s3 + $0x38] sm:$0xff]  ;;  %v149_v13 = vld [vmem:[%s712_s3 + $0x30] sm:$0xff] }
  0x21   :  { %385 = vmatpush3.msra.mxu0 %v53_v2  ;;  %392 = vmatpush3.msra.mxu1 %v157_v5  ;;  %v148_v14 = vld [vmem:[%s712_s3 + $0x28] sm:$0xff]  ;;  %v147_v15 = vld [vmem:[%s712_s3 + $0x20] sm:$0xff]  ;;  %v146_v16 = vld [vmem:[%s712_s3 + $0x18] sm:$0xff] }
  0x22   :  { %387 = vmatmul.mubr.msk.f32.vlgmr.msra.gmra.mxu0 %vm62_vm2, %v52_v3  ;;  %393 = vmatprep.subr.mxu1 %v513_v0  ;;  %v145_v17 = vld [vmem:[%s712_s3 + $0x10] sm:$0xff]  ;;  %v144_v18 = vld [vmem:[%s712_s3 + $0x8] sm:$0xff]  ;;  %v143_v19 = vld [vmem:[%s712_s3] sm:$0xff] }
  0x23   :  { %424 = vmatprep.subr.mxu0 %v513_v0  ;;  %394 = vmatpush3.msra.mxu1 %v156_v6  ;;  %v254_v20 = vld [vmem:[%s714_s5 + $0x78] sm:$0xff]  ;;  %v253_v21 = vld [vmem:[%s714_s5 + $0x70] sm:$0xff]  ;;  %v252_v22 = vld [vmem:[%s714_s5 + $0x68] sm:$0xff] }
  0x24   :  { %456 = vmatprep.mubr.msk.f32.mxu0 %vm514_vm0, %v513_v0  ;;  %395 = vmatprep.subr.mxu1 %v513_v0  ;;  %v251_v23 = vld [vmem:[%s714_s5 + $0x60] sm:$0xff]  ;;  %v250_v24 = vld [vmem:[%s714_s5 + $0x58] sm:$0xff]  ;;  %v249_v25 = vld [vmem:[%s714_s5 + $0x50] sm:$0xff] }
  0x25   :  { %396 = vmatpush3.msra.mxu1 %v155_v7  ;;  %425 = vmatpush3.msra.mxu0 %v254_v20  ;;  %v248_v26 = vld [vmem:[%s714_s5 + $0x48] sm:$0xff]  ;;  %v247_v27 = vld [vmem:[%s714_s5 + $0x40] sm:$0xff]  ;;  %v246_v28 = vld [vmem:[%s714_s5 + $0x38] sm:$0xff] }
  0x26   :  { %397 = vmatprep.subr.mxu1 %v513_v0  ;;  %426 = vmatprep.subr.mxu0 %v513_v0  ;;  %v245_v29 = vld [vmem:[%s714_s5 + $0x30] sm:$0xff]  ;;  %v244_v30 = vld [vmem:[%s714_s5 + $0x28] sm:$0xff]  ;;  %v243_v31 = vld [vmem:[%s714_s5 + $0x20] sm:$0xff] }
  0x27   :  { %398 = vmatpush3.msra.mxu1 %v154_v8  ;;  %427 = vmatpush3.msra.mxu0 %v253_v21  ;;  %v242_v32 = vld [vmem:[%s714_s5 + $0x18] sm:$0xff]  ;;  %v340_v33 = vld [vmem:[%s711_s2] ss:$0 sm:$0xff]  ;;  %v241_v39 = vld [vmem:[%s714_s5 + $0x10] sm:$0xff] }
  0x28   :  { %399 = vmatprep.subr.mxu1 %v513_v0  ;;  %428 = vmatprep.subr.mxu0 %v513_v0  ;;  %v240_v40 = vld [vmem:[%s714_s5 + $0x8] sm:$0xff]  ;;  %v239_v41 = vld [vmem:[%s714_s5] sm:$0xff]  ;;  %v343_v42 = vld [vmem:[#allocation4] ss:$0 sm:$0xff] }
  0x29   :  { %400 = vmatpush3.msra.mxu1 %v153_v9  ;;  %429 = vmatpush3.msra.mxu0 %v252_v22  ;;  %v344_v48 = vld [vmem:[%s715_s6] ss:$0 sm:$0xff] }
  0x2a   :  { %401 = vmatprep.subr.mxu1 %v513_v0  ;;  %430 = vmatprep.subr.mxu0 %v513_v0 }
  0x2b   :  { %402 = vmatpush3.msra.mxu1 %v152_v10  ;;  %431 = vmatpush3.msra.mxu0 %v251_v23 }
  0x2c   :  { %403 = vmatprep.subr.mxu1 %v513_v0  ;;  %432 = vmatprep.subr.mxu0 %v513_v0 }
  0x2d   :  { %404 = vmatpush3.msra.mxu1 %v151_v11  ;;  %433 = vmatpush3.msra.mxu0 %v250_v24 }
  0x2e   :  { %405 = vmatprep.subr.mxu1 %v513_v0  ;;  %434 = vmatprep.subr.mxu0 %v513_v0 }
  0x2f   :  { %406 = vmatpush3.msra.mxu1 %v150_v12  ;;  %435 = vmatpush3.msra.mxu0 %v249_v25 }
  0x30   :  { %407 = vmatprep.subr.mxu1 %v513_v0  ;;  %436 = vmatprep.subr.mxu0 %v513_v0 }
  0x31   :  { %408 = vmatpush3.msra.mxu1 %v149_v13  ;;  %437 = vmatpush3.msra.mxu0 %v248_v26 }
  0x32   :  { %409 = vmatprep.subr.mxu1 %v513_v0  ;;  %438 = vmatprep.subr.mxu0 %v513_v0 }
  0x33   :  { %410 = vmatpush3.msra.mxu1 %v148_v14  ;;  %439 = vmatpush3.msra.mxu0 %v247_v27 }
  0x34   :  { %411 = vmatprep.subr.mxu1 %v513_v0  ;;  %440 = vmatprep.subr.mxu0 %v513_v0 }
  0x35   :  { %412 = vmatpush3.msra.mxu1 %v147_v15  ;;  %441 = vmatpush3.msra.mxu0 %v246_v28 }
  0x36   :  { %413 = vmatprep.subr.mxu1 %v513_v0  ;;  %442 = vmatprep.subr.mxu0 %v513_v0 }
  0x37   :  { %414 = vmatpush3.msra.mxu1 %v146_v16  ;;  %443 = vmatpush3.msra.mxu0 %v245_v29 }
  0x38   :  { %415 = vmatprep.subr.mxu1 %v513_v0  ;;  %444 = vmatprep.subr.mxu0 %v513_v0 }
  0x39   :  { %416 = vmatpush3.msra.mxu1 %v145_v17  ;;  %445 = vmatpush3.msra.mxu0 %v244_v30 }
  0x3a   :  { %417 = vmatprep.subr.mxu1 %v513_v0  ;;  %446 = vmatprep.subr.mxu0 %v513_v0 }
  0x3b   :  { %418 = vmatpush3.msra.mxu1 %v144_v18  ;;  %447 = vmatpush3.msra.mxu0 %v243_v31 }
  0x3c   :  { %419 = vmatprep.subr.mxu1 %v513_v0  ;;  %448 = vmatprep.subr.mxu0 %v513_v0 }
  0x3d   :  { %420 = vmatpush3.msra.mxu1 %v143_v19  ;;  %449 = vmatpush3.msra.mxu0 %v242_v32 }
  0x3e   :  { %450 = vmatprep.subr.mxu0 %v513_v0 }
  0x3f   :  { %451 = vmatpush3.msra.mxu0 %v241_v39 }
  0x40   :  { %452 = vmatprep.subr.mxu0 %v513_v0 }
  0x41   :  { %453 = vmatpush3.msra.mxu0 %v240_v40 }
  0x42   :  { %454 = vmatprep.subr.mxu0 %v513_v0 }
  0x43   :  { %455 = vmatpush3.msra.mxu0 %v239_v41 }
  0xe2   :  { %v136_v34 = vpop.f32.mrf.mxu0 }
  0xe3   :  { %v137_v35 = vadd.f32 %v340_v33, %v136_v34 }
  0xe4   :  { %v388_v36 = vpop.f32.mrf.mxu0 }
  0xe5   :  { %v141_v37 = vmul.f32 0.01, %v137_v35  ;;  %vm140_vm3 = vcmp.gt.f32.partialorder %v137_v35, 0.0 }
  0xe7   :  { %v142_v38 = vsel %vm140_vm3, %v137_v35, %v141_v37 }
  0xe8   :  { %422 = vmatmul.mubr.f32.vlgmr.msra.gmra.mxu1 %v142_v38 }
 0x1a8   :  { %v232_v43 = vpop.f32.mrf.mxu1 }
 0x1a9   :  { %v233_v44 = vadd.f32 %v343_v42, %v232_v43 }
 0x1aa   :  { %v423_v45 = vpop.f32.mrf.mxu1 }
 0x1ab   :  { %vm236_vm4 = vcmp.gt.f32.partialorder %v233_v44, 0.0  ;;  %v237_v46 = vmul.f32 0.01, %v233_v44 }
 0x1ad   :  { %v238_v47 = vsel %vm236_vm4, %v233_v44, %v237_v46 }
 0x1ae   :  { %457 = vmatmul.mubr.f32.vlgmr.msra.gmra.mxu0 %v238_v47 }
 0x26e   :  { %v328_v49 = vpop.f32.mrf.mxu0 }
 0x26f   :  { %v329_v50 = vadd.f32 %v344_v48, %v328_v49 }
 0x270   :  { %v458_v51 = vpop.f32.mrf.mxu0 }
 0x271   :  { %333 = vst.msk [vmem:[%s716_s7] sm:$0xff] %vm332_vm5, %v329_v50 }
 0x272   :  { %338 = vsyncpa [#allocation3], 1 }
 0x273   :  { %339 = vsyncpa [#allocation5], 1 }

</bundles_post_ra>
